<compile_context>
chip_gen: v5e
topology: v5e:2x2
jax: 0.10.0
libtpu: 0.0.40
codegen_flags: <defaults>
</compile_context>

<pallas_src>
import math
import jax
import jax.numpy as jnp
from jax.experimental import pallas as pl
from jax.experimental.pallas import tpu as pltpu


def lstm_cell_kernel(x_ref, h_ref, c_ref, w_ref, b_ref, out_ref):
    """One LSTM step in the lane-dense (batch-on-sublane) layout.

    x_ref  : (B, I)     rows = samples
    h_ref  : (1, H)     previous hidden state (shared across batch, per spec)
    c_ref  : (1, H)     previous cell state   (shared across batch, per spec)
    w_ref  : (I+H, 4H)  fused [W_x ; W_h]^T, gate order [i, f, g, o] on lanes
    b_ref  : (1, 4H)    combined bias row (b_i* + b_h*)
    out_ref: (B, 2H)    [h_next | c_next] written as one lane-dense slab
    """
    B, I = x_ref.shape
    H = c_ref.shape[1]

    # Static, sublane-aligned slices of the fused weight (one input DMA).
    wx = w_ref[:I, :]          # (I, 4H)
    wh = w_ref[I:, :]          # (H, 4H)

    # h is shared across the whole batch: compute its (1, 4H) gate row once
    # per step and fold it into the bias row (no 8x-redundant h GEMV).
    row = jnp.dot(h_ref[...], wh, preferred_element_type=jnp.float32) + b_ref[...]

    # Main MXU pass: (B, I) @ (I, 4H) -> (B, 4H) == (8, 128): one dense f32
    # vreg, every lane live.  `row` broadcasts over the sublane (batch) axis.
    z = jnp.dot(x_ref[...], wx, preferred_element_type=jnp.float32) + row

    # Single EUP pass: tanh(v) = 2*sigmoid(2v) - 1.  Pre-double the g band
    # (lanes [2H, 3H)) with a constant lane mask, one sigmoid over the whole
    # vreg, then fix the g band up with VPU ops.
    lane = jax.lax.broadcasted_iota(jnp.int32, z.shape, dimension=1)
    g_band = (lane >= 2 * H) & (lane < 3 * H)
    s = jax.nn.sigmoid(jnp.where(g_band, 2.0 * z, z))
    act = jnp.where(g_band, 2.0 * s - 1.0, s)        # [ i | f | g | o ]

    i_g = act[:, 0 * H:1 * H]
    f_g = act[:, 1 * H:2 * H]
    g_g = act[:, 2 * H:3 * H]
    o_g = act[:, 3 * H:4 * H]

    c_prev = c_ref[...]                              # (1, H) broadcasts over rows
    c_next = f_g * c_prev + i_g * g_g                # (B, H)
    h_next = o_g * jnp.tanh(c_next)                  # (B, H)

    # One lane-dense output slab -> a single output DMA.
    out_ref[:, :H] = h_next
    out_ref[:, H:] = c_next


def naive_lstm_forward(x, h, c, w_c, b_row):
    """x: (I, B) (columns are samples, matching `w_ii @ x`); h, c: (1, H).

    Returns (h_next, c_next), each (B, H) — matching the PyTorch module's
    `h_next_t.t()` / `c_next_t.t()` return values.
    """
    I, B = x.shape
    H = h.shape[1]

    # Only remaining wrapper op: put samples on the sublane axis.  The old
    # broadcast_to / concatenate / (B, I+H) HBM materialization are gone.
    xt = x.T

    vmem = pl.BlockSpec(memory_space=pltpu.MemorySpace.VMEM)
    out = pl.pallas_call(
        lstm_cell_kernel,
        out_shape=jax.ShapeDtypeStruct((B, 2 * H), jnp.float32),
        in_specs=[vmem] * 5,
        out_specs=vmem,
    )(xt, h, c, w_c, b_row)

    # Trace-level slices (free) to split the fused output slab.
    return out[:, :H], out[:, H:]


def init_params(key, input_size, hidden_size):
    """Deterministic init mirroring reset_weights(): U(0.2 - stdv, 0.2 + stdv)."""
    stdv = 1.0 / math.sqrt(hidden_size)
    lo, hi = 0.2 - stdv, 0.2 + stdv
    names = ["w_ii", "w_hi", "b_ii", "b_hi",
             "w_if", "w_hf", "b_if", "b_hf",
             "w_io", "w_ho", "b_io", "b_ho",
             "w_ig", "w_hg", "b_ig", "b_hg"]
    shapes = {
        "w_ii": (hidden_size, input_size), "w_hi": (hidden_size, hidden_size),
        "b_ii": (hidden_size, 1), "b_hi": (hidden_size, 1),
        "w_if": (hidden_size, input_size), "w_hf": (hidden_size, hidden_size),
        "b_if": (hidden_size, 1), "b_hf": (hidden_size, 1),
        "w_io": (hidden_size, input_size), "w_ho": (hidden_size, hidden_size),
        "b_io": (hidden_size, 1), "b_ho": (hidden_size, 1),
        "w_ig": (hidden_size, input_size), "w_hg": (hidden_size, hidden_size),
        "b_ig": (hidden_size, 1), "b_hg": (hidden_size, 1),
    }
    keys = jax.random.split(key, len(names))
    return {n: jax.random.uniform(k, shapes[n], jnp.float32, lo, hi)
            for n, k in zip(names, keys)}


def stack_params_fused(p):
    """One-time re-layout of the 16 PyTorch params into the fused kernel layout."""
    # Gate order [i, f, g, o] along the lane (4H) axis.  Keep this in sync with
    # the kernel's tanh band (lanes [2H, 3H)).
    w_x = jnp.concatenate([p["w_ii"], p["w_if"], p["w_ig"], p["w_io"]], axis=0)  # (4H, I)
    w_h = jnp.concatenate([p["w_hi"], p["w_hf"], p["w_hg"], p["w_ho"]], axis=0)  # (4H, H)
    w_c = jnp.concatenate([w_x, w_h], axis=1).T                                  # (I+H, 4H)
    b_row = jnp.concatenate([p["b_ii"] + p["b_hi"],
                             p["b_if"] + p["b_hf"],
                             p["b_ig"] + p["b_hg"],
                             p["b_io"] + p["b_ho"]], axis=0).T                   # (1, 4H)
    return w_c, b_row


def reference_forward(x, h, c, p):
    """Pure-JAX transcription of the PyTorch forward for the correctness check."""
    h_t = h.T
    c_t = c.T
    i = jax.nn.sigmoid(p["w_ii"] @ x + p["b_ii"] + p["w_hi"] @ h_t + p["b_hi"])
    f = jax.nn.sigmoid(p["w_if"] @ x + p["b_if"] + p["w_hf"] @ h_t + p["b_hf"])
    g = jnp.tanh(p["w_ig"] @ x + p["b_ig"] + p["w_hg"] @ h_t + p["b_hg"])
    o = jax.nn.sigmoid(p["w_io"] @ x + p["b_io"] + p["w_ho"] @ h_t + p["b_ho"])
    c_next_t = f * c_t + i * g
    h_next_t = o * jnp.tanh(c_next_t)
    return h_next_t.T, c_next_t.T


if __name__ == "__main__":
    input_size = 16
    hidden_size = 32   # 4H = 128 lanes: exactly one f32 vreg of gate pre-acts
    batch = 8          # 8 sublanes

    key = jax.random.PRNGKey(0)
    kp, kx, kh, kc = jax.random.split(key, 4)

    params = init_params(kp, input_size, hidden_size)
    w_c, b_row = stack_params_fused(params)

    x = jax.random.normal(kx, (input_size, batch), jnp.float32)
    h = jax.random.normal(kh, (1, hidden_size), jnp.float32)
    c = jax.random.normal(kc, (1, hidden_size), jnp.float32)

    fwd = jax.jit(naive_lstm_forward)
    h_next, c_next = fwd(x, h, c, w_c, b_row)
    jax.block_until_ready((h_next, c_next))

    # Sanity-check against the pure-JAX transcription of the PyTorch math.
    # (Slightly loose: split K-sum reorder + tanh-via-sigmoid identity.)
    h_ref, c_ref = reference_forward(x, h, c, params)
    assert h_next.shape == (batch, hidden_size)
    assert c_next.shape == (batch, hidden_size)
    assert jnp.allclose(h_next, h_ref, atol=3e-5, rtol=3e-5)
    assert jnp.allclose(c_next, c_ref, atol=3e-5, rtol=3e-5)

    print("KERNEL_OK")
</pallas_src>

<mosaic_0001>
module attributes {stable_mosaic.version = 11 : i64} {
  func.func @lstm_cell_kernel(%arg0: memref<8x16xf32, #tpu.memory_space<vmem>>, %arg1: memref<1x32xf32, #tpu.memory_space<vmem>>, %arg2: memref<1x32xf32, #tpu.memory_space<vmem>>, %arg3: memref<48x128xf32, #tpu.memory_space<vmem>>, %arg4: memref<1x128xf32, #tpu.memory_space<vmem>>, %arg5: memref<8x64xf32, #tpu.memory_space<vmem>>) attributes {dimension_semantics = [], scalar_prefetch = 0 : i64, scratch_operands = 0 : i64, tpu.core_type = #tpu.core_type<tc>} {
    %c0 = arith.constant 0 : index
    %c0_0 = arith.constant 0 : index
    %0 = vector.load %arg3[%c0, %c0_0] : memref<48x128xf32, #tpu.memory_space<vmem>>, vector<16x128xf32>
    %c16 = arith.constant 16 : index
    %c0_1 = arith.constant 0 : index
    %1 = vector.load %arg3[%c16, %c0_1] : memref<48x128xf32, #tpu.memory_space<vmem>>, vector<32x128xf32>
    %c0_2 = arith.constant 0 : index
    %c0_3 = arith.constant 0 : index
    %2 = vector.load %arg1[%c0_2, %c0_3] : memref<1x32xf32, #tpu.memory_space<vmem>>, vector<1x32xf32>
    %cst = arith.constant dense<0.000000e+00> : vector<1x128xf32>
    %3 = tpu.matmul %2, %1, %cst {dimension_numbers = #tpu.dot_dimension_numbers<[1], [0], [0], [1], [0, 0, 1, 1], [], []>} : vector<1x32xf32>, vector<32x128xf32>, vector<1x128xf32> -> vector<1x128xf32>
    %c0_4 = arith.constant 0 : index
    %c0_5 = arith.constant 0 : index
    %4 = vector.load %arg4[%c0_4, %c0_5] : memref<1x128xf32, #tpu.memory_space<vmem>>, vector<1x128xf32>
    %5 = arith.addf %3, %4 : vector<1x128xf32>
    %c0_6 = arith.constant 0 : index
    %c0_7 = arith.constant 0 : index
    %6 = vector.load %arg0[%c0_6, %c0_7] : memref<8x16xf32, #tpu.memory_space<vmem>>, vector<8x16xf32>
    %cst_8 = arith.constant dense<0.000000e+00> : vector<8x128xf32>
    %7 = tpu.matmul %6, %0, %cst_8 {dimension_numbers = #tpu.dot_dimension_numbers<[1], [0], [0], [1], [0, 0, 1, 1], [], []>} : vector<8x16xf32>, vector<16x128xf32>, vector<8x128xf32> -> vector<8x128xf32>
    %8 = vector.broadcast %5 : vector<1x128xf32> to vector<8x128xf32>
    %9 = arith.addf %7, %8 : vector<8x128xf32>
    %10 = tpu.iota {dimensions = array<i32: 1>} : vector<8x128xi32>
    %c64_i32 = arith.constant 64 : i32
    %11 = vector.broadcast %c64_i32 : i32 to vector<8x128xi32>
    %12 = arith.cmpi sge, %10, %11 : vector<8x128xi32>
    %c96_i32 = arith.constant 96 : i32
    %13 = vector.broadcast %c96_i32 : i32 to vector<8x128xi32>
    %14 = arith.cmpi slt, %10, %13 : vector<8x128xi32>
    %15 = arith.andi %12, %14 : vector<8x128xi1>
    %cst_9 = arith.constant 2.000000e+00 : f32
    %16 = vector.broadcast %cst_9 : f32 to vector<8x128xf32>
    %17 = arith.mulf %16, %9 : vector<8x128xf32>
    %18 = arith.select %15, %17, %9 : vector<8x128xi1>, vector<8x128xf32>
    %19 = arith.negf %18 : vector<8x128xf32>
    %20 = math.exp %19 : vector<8x128xf32>
    %cst_10 = arith.constant 1.000000e+00 : f32
    %21 = vector.broadcast %cst_10 : f32 to vector<8x128xf32>
    %22 = arith.addf %21, %20 : vector<8x128xf32>
    %23 = arith.divf %21, %22 : vector<8x128xf32>
    %cst_11 = arith.constant 2.000000e+00 : f32
    %24 = vector.broadcast %cst_11 : f32 to vector<8x128xf32>
    %25 = arith.mulf %24, %23 : vector<8x128xf32>
    %cst_12 = arith.constant 1.000000e+00 : f32
    %26 = vector.broadcast %cst_12 : f32 to vector<8x128xf32>
    %27 = arith.subf %25, %26 : vector<8x128xf32>
    %28 = arith.select %15, %27, %23 : vector<8x128xi1>, vector<8x128xf32>
    %29 = vector.extract_strided_slice %28 {offsets = [0, 0], sizes = [8, 32], strides = [1, 1]} : vector<8x128xf32> to vector<8x32xf32>
    %30 = vector.extract_strided_slice %28 {offsets = [0, 32], sizes = [8, 32], strides = [1, 1]} : vector<8x128xf32> to vector<8x32xf32>
    %31 = vector.extract_strided_slice %28 {offsets = [0, 64], sizes = [8, 32], strides = [1, 1]} : vector<8x128xf32> to vector<8x32xf32>
    %32 = vector.extract_strided_slice %28 {offsets = [0, 96], sizes = [8, 32], strides = [1, 1]} : vector<8x128xf32> to vector<8x32xf32>
    %c0_13 = arith.constant 0 : index
    %c0_14 = arith.constant 0 : index
    %33 = vector.load %arg2[%c0_13, %c0_14] : memref<1x32xf32, #tpu.memory_space<vmem>>, vector<1x32xf32>
    %34 = vector.broadcast %33 : vector<1x32xf32> to vector<8x32xf32>
    %35 = arith.mulf %30, %34 : vector<8x32xf32>
    %36 = arith.mulf %29, %31 : vector<8x32xf32>
    %37 = arith.addf %35, %36 : vector<8x32xf32>
    %38 = math.tanh %37 : vector<8x32xf32>
    %39 = arith.mulf %32, %38 : vector<8x32xf32>
    %c0_15 = arith.constant 0 : index
    %c0_16 = arith.constant 0 : index
    %40 = vector.load %arg5[%c0_15, %c0_16] : memref<8x64xf32, #tpu.memory_space<vmem>>, vector<8x32xf32>
    tpu.vector_store %arg5[%c0_15, %c0_16], %39 {strides = array<i32>} : memref<8x64xf32, #tpu.memory_space<vmem>>, vector<8x32xf32>,
    %c0_17 = arith.constant 0 : index
    %c32 = arith.constant 32 : index
    %41 = vector.load %arg5[%c0_17, %c32] : memref<8x64xf32, #tpu.memory_space<vmem>>, vector<8x32xf32>
    tpu.vector_store %arg5[%c0_17, %c32], %37 {strides = array<i32>} : memref<8x64xf32, #tpu.memory_space<vmem>>, vector<8x32xf32>,
    return
  }
}

</mosaic_0001>

<bundles_post_ra>
// kernel: naive_lstm_forward.1
= control target key start
LH: loop header
LB: loop body
LE: loop exit
PB: predicated region body
PF: predicated region fallthrough
CT: control target
= control target key end

     0   :  { %10 = vsyncpa [#allocation3], 0  ;;  %s309_s0 = inlined_call_operand.hbm [shape: f32[8,16], index: 0, kind: input, shape index: {}]   ;;  %s310_s1 = inlined_call_operand.vmem [shape: f32[1,32], index: 1, kind: input, shape index: {}]   ;;  %s311_s2 = inlined_call_operand.vmem [shape: f32[1,32], index: 2, kind: input, shape index: {}]   ;;  %s312_s3 = inlined_call_operand.hbm [shape: f32[48,128], index: 3, kind: input, shape index: {}]   ;;  %s313_s4 = inlined_call_operand.vmem [shape: f32[1,128], index: 4, kind: input, shape index: {}]   ;;  %s314_s5 = inlined_call_operand.vmem [shape: f32[8,64], index: 5, kind: output, shape index: {}]  }
   0x1   :  { %s17_s20 = sshll.u32 %s309_s0, 4  ;;  %s18_s20 = int_to_ptr.hbm [resolvable:$true] %s17_s20 }
   0x2   :  { %11 = vsyncpa [#allocation5], 0  ;;  %s242_s21 = smov [#allocation2]   ;;  %s31_s25 = sshll.u32 %s312_s3, 4  ;;  %s32_s25 = int_to_ptr.hbm [resolvable:$true] %s31_s25 }
   0x3   :  { %s19_s22 = sshll.u32 %s242_s21, 4  ;;  %s243_s26 = smov [#allocation4]   ;;  %s20_s22 = int_to_ptr.vmem [resolvable:$true] %s19_s22 }
   0x4   :  { %22 = dma.hbm_to_vmem [thread:$0]  %s18_s20, 128, %s20_s22, [#allocation3]  }
   0x5   :  { %s33_s27 = sshll.u32 %s243_s26, 4  ;;  %s244_s28 = smov 128   ;;  %s34_s27 = int_to_ptr.vmem [resolvable:$true] %s33_s27 }
   0x6   :  { %s245_s29 = smov 8  }
   0x7   :  { %39 = dma.hbm_to_vmem [thread:$0]  %s32_s25, 768, %s34_s27, [#allocation5], %s244_s28, %s244_s28, %s245_s29  }
   0x8   :  { %238 = dma.done.wait [#allocation3], 128  }
   0x9   :  { %239 = vsyncadd [#allocation3], 4294967168 }
   0xa   :  { %240 = dma.done.wait [#allocation5], 768  }
   0xb   :  { %241 = vsyncadd [#allocation5], 4294966528  ;;  %v55_v0 = vld [vmem:[#allocation4 + $0x28] sm:$0xff]  ;;  %v54_v1 = vld [vmem:[#allocation4 + $0x20] sm:$0xff]  ;;  %vm84_vm0 = vcmask 130048   ;;  %vm58_vm1 = vcmask 261120   ;;  %v108_v8 = vlaneseq }
   0xc   :  { %74 = vmatpush.msra.mxu0 %v55_v0  ;;  %v51_v2 = vld [vmem:[#allocation4 + $0x8] sm:$0xff]  ;;  %v53_v3 = vld [vmem:[#allocation4 + $0x18] sm:$0xff]  ;;  %v50_v4 = vld [vmem:[#allocation4] sm:$0xff]  ;;  %s247_s8 = smov 32   ;;  %vm165_vm9 = vcmask 523520  }
   0xd   :  { %102 = vmatpush.msra.mxu1 %v51_v2  ;;  %v82_v5 = vld [vmem:[#allocation2] sm:$0xff]  ;;  %v52_v6 = vld [vmem:[#allocation4 + $0x10] sm:$0xff]  ;;  %v109_v10 = vand.u32 127, %v108_v8 }
   0xe   :  { %75 = vmatpush.msra.mxu0 %v54_v1  ;;  %v56_v7 = vld [vmem:[%s310_s1] sm:$0x1]  ;;  %s246_s1 = smov 64  }
   0xf   :  { %103 = vmatpush.msra.mxu1 %v50_v4  ;;  %v57_v9 = vld [vmem:[%s313_s4] sm:$0x1]  ;;  %vm110_vm2 = vcmp.ge.s32.totalorder %v109_v10, 64  ;;  %vm111_vm3 = vcmp.lt.s32.totalorder %v109_v10, 96 }
  0x10   :  { %76 = vmatpush.msra.mxu0 %v53_v3  ;;  %174 = vmatmul.msk.f32.vlgmr.msra.gmra.mxu1 %vm84_vm0, %v82_v5  ;;  %vm291_vm4 = vmand %vm110_vm2, %vm111_vm3  ;;  %v183_v35 = vld [vmem:[%s311_s2] ss:$0 sm:$0xff] }
  0x12   :  { %77 = vmatpush.msra.mxu0 %v52_v6 }
  0x13   :  { %173 = vmatmul.msk.f32.vlgmr.msra.gmra.mxu0 %vm58_vm1, %v56_v7 }
  0x8d   :  { %v105_v13 = vpop.f32.mrf.mxu1 }
  0x90   :  { %v79_v11 = vpop.f32.mrf.mxu0 }
  0x91   :  { %v80_v12 = vadd.f32 %v79_v11, %v57_v9 }
  0x93   :  { %v83_v14 = vperm.slane %v80_v12, 0 }
  0x95   :  { %v106_v15 = vadd.f32 %v105_v13, %v83_v14 }
  0x97   :  { %v113_v17 = vmul.f32 2.0, %v106_v15 }
  0x99   :  { %v114_v18 = vsel %vm291_vm4, %v113_v17, %v106_v15 }
  0x9a   :  { %v175_v19 = vmul.f32 -1.442695, %v114_v18 }
  0x9c   :  { %184 = vpow2.f32 %v175_v19 }
  0xa2   :  { %v185_v20 = vpop.eup %184 }
  0xa3   :  { %v118_v21 = vadd.f32 1.0, %v185_v20 }
  0xa5   :  { %186 = vrcp.f32 %v118_v21  ;;  %v130_v25 = vand.u32 2147483648, %v118_v21  ;;  %v128_v27 = vand.u32 2147483647, %v118_v21  ;;  %vm124_vm6 = vweird.f32 %v118_v21 }
  0xa7   :  { %v131_v29 = vor.u32 1.1754944e-38, %v130_v25  ;;  %vm129_vm8 = vcmp.eq.f32.partialorder %v128_v27, 8.507059e+37 }
  0xab   :  { %v187_v22 = vpop.eup %186 }
  0xac   :  { %v120_v23 = vmul.f32 %v187_v22, %v118_v21  ;;  %vm125_vm5 = vweird.f32 %v187_v22 }
  0xad   :  { %vm126_vm7 = vmor %vm124_vm6, %vm125_vm5 }
  0xae   :  { %v121_v24 = vsub.f32 1.0, %v120_v23 }
  0xb0   :  { %v122_v26 = vmul.f32 %v187_v22, %v121_v24 }
  0xb2   :  { %v123_v28 = vadd.f32 %v187_v22, %v122_v26 }
  0xb4   :  { %v127_v30 = vsel %vm126_vm7, %v187_v22, %v123_v28 }
  0xb5   :  { %v132_v31 = vsel %vm129_vm8, %v131_v29, %v127_v30 }
  0xb6   :  { %v134_v32 = vmul.f32 2.0, %v132_v31 }
  0xb8   :  { %v176_v33 = vadd.f32 -1.0, %v134_v32 }
  0xba   :  { %v136_v34 = vsel %vm291_vm4, %v176_v33, %v132_v31 }
  0xbb   :  { %145 = vrot.lane.b32.xlu0 %v136_v34, %s246_s1 }
  0xc3   :  { %140 = vrot.lane.b32.xlu0 %v183_v35, %s247_s8 }
 0x12d   :  { %v146_v36 = vpop.permute.xlu0 %145 }
 0x12e   :  { %v148_v37 = vmul.f32 %v146_v36, %v136_v34 }
 0x130   :  { %150 = vrot.lane.b32.xlu1 %v148_v37, %s247_s8 }
 0x135   :  { %v141_v38 = vpop.permute.xlu0 %140 }
 0x136   :  { %v143_v39 = vmul.f32 %v141_v38, %v136_v34 }
 0x1a2   :  { %v151_v40 = vpop.permute.xlu1 %150 }
 0x1a3   :  { %v153_v41 = vadd.f32 %v151_v40, %v143_v39 }
 0x1a5   :  { %188 = vtanh.f32 %v153_v41 }
 0x1ab   :  { %v189_v42 = vpop.eup %188 }
 0x1ac   :  { %156 = vrot.lane.b32.xlu1 %v189_v42, %s246_s1 }
 0x21e   :  { %v157_v43 = vpop.permute.xlu1 %156 }
 0x21f   :  { %v159_v44 = vmul.f32 %v157_v43, %v136_v34 }
 0x221   :  { %161 = vrot.lane.b32.xlu2 %v159_v44, %s247_s8 }
 0x27b   :  { %v162_v45 = vpop.permute.xlu2 %161 }
 0x27c   :  { %164 = vst.msk [vmem:[%s314_s5] sm:$0xff] %vm58_vm1, %v162_v45 }
 0x27d   :  { %166 = vst.msk [vmem:[%s314_s5] sm:$0xff] %vm165_vm9, %v153_v41 }
 0x27e   :  { %171 = vsyncpa [#allocation3], 1 }
 0x27f   :  { %172 = vsyncpa [#allocation5], 1 }

</bundles_post_ra>
